<compile_context>
chip_gen: v5e
topology: v5e:2x2
jax: 0.10.0
libtpu: 0.0.40
codegen_flags: <defaults>
</compile_context>

<pallas_src>
import functools
import math

import jax
import jax.numpy as jnp
from jax.experimental import pallas as pl
from jax.experimental.pallas import tpu as pltpu


def _cdiv(a: int, b: int) -> int:
    return -(-a // b)


def _round_up(x: int, m: int) -> int:
    return ((x + m - 1) // m) * m


def _sublane_multiple(dtype) -> int:
    """Row-tile granularity: 8 for 4-byte dtypes, 16 for 2-byte, 32 for 1-byte."""
    itemsize = int(jnp.dtype(dtype).itemsize)
    return max(8, 32 // max(itemsize, 1))


def _vmem_capacity_bytes() -> int:
    """Physical VMEM per TensorCore (64 MiB on v7x, 128 MiB on v5e/v6e)."""
    try:
        cap = int(getattr(pltpu.get_tpu_info(), "vmem_capacity_bytes", 0))
        if cap > 0:
            return cap
    except Exception:
        pass
    return 64 << 20  # conservative (v7x) fallback


def _crop_rows_kernel(x_ref, o_ref, *, nl: int, l_out: int):
    # Generic path. x_ref: (TILE_R, L) VMEM tile; o_ref: (TILE_R, L_out) tile.
    # Static lane-axis slice: keep elements [nl, nl + l_out) of every row.
    o_ref[...] = x_ref[:, nl:nl + l_out]


def _copy_kernel(x_ref, o_ref):
    # Lane-aligned path: the crop offset is folded into the input index_map, so
    # the kernel body is a pure VMEM copy (no in-register lane re-layout).
    o_ref[...] = x_ref[...]


def pad1d(x: jnp.ndarray, nl: int = 1, nr: int = 1, *,
          vmem_budget_bytes: int | None = None,
          min_tile_bytes: int = 2 << 20,
          target_grid_steps: int = 8,
          use_pallas: bool | None = None) -> jnp.ndarray:
    """Pad1D(nl, nr).forward(x) for x of shape (N, C, L): crop `nl` elements from
    the left and `nr` from the right of the last axis.

    use_pallas: None -> auto (Pallas kernel only when l_out >= 128; narrower
    outputs fall back to jax.lax.slice so XLA fuses the crop into the consumer
    rather than paying a masked-store-bound standalone HBM round trip).
    True / False force the Pallas / XLA path.
    """
    nl = int(nl)
    nr = int(nr)
    if nl < 0 or nr < 0:
        raise ValueError(f"Pad1D crop amounts must be non-negative, got nl={nl}, nr={nr}")
    if nl == 0 and nr == 0:
        return x  # torch.nn.Identity() branch

    n, c, l = x.shape
    l_out = l - nl - nr
    if l_out <= 0:
        raise ValueError(f"crop ({nl}, {nr}) is not smaller than input length {l}")

    if use_pallas is None:
        use_pallas = l_out >= 128
    if not use_pallas:
        # l_out < 128: every Pallas output row would be a masked partial store and
        # the writeback DMA lane-density-bound; let XLA fuse the slice instead.
        return jax.lax.slice_in_dim(x, nl, l - nr, axis=2)

    # The crop acts independently per (n, c) row: flatten (free reshape) and grid
    # over large row tiles so each step moves multi-MiB contiguous DMAs.
    rows = n * c
    x2 = x.reshape(rows, l)
    itemsize = int(jnp.dtype(x.dtype).itemsize)
    row_mult = _sublane_multiple(x.dtype)

    # --- generation-aware VMEM budget ------------------------------------------------
    vmem_cap = _vmem_capacity_bytes()
    if vmem_budget_bytes is None:
        # ~24 MiB of double-buffered tiles on v7x (64 MiB/TC), 32 MiB on v5e/v6e.
        vmem_budget_bytes = max(4 << 20, min(32 << 20, vmem_cap // 2 - (8 << 20)))
    vmem_budget_bytes = int(min(int(vmem_budget_bytes), vmem_cap - (8 << 20)))

    # --- choose path + padded ((8,128)-tiled) per-row footprint ------------------------
    lane_aligned = (l_out % 128 == 0) and (nl % 128 == 0)
    if lane_aligned:
        # Crop folded into the input BlockSpec: lane blocks of width lane_w with a
        # constant block offset of nl // lane_w.  Only the kept lanes are DMA'd.
        lane_w = l_out if nl == 0 else math.gcd(nl, l_out)  # multiple of 128
        padded_in_row = lane_w * itemsize
        padded_out_row = lane_w * itemsize
    else:
        lane_w = None
        padded_in_row = _round_up(l, 128) * itemsize
        padded_out_row = _round_up(l_out, 128) * itemsize
    bytes_per_row = padded_in_row + padded_out_row  # one padded input + output row

    # --- row-tile sizing ---------------------------------------------------------------
    #   floor : >= ~min_tile_bytes per input buffer (per-step overhead ~0.35 us)
    #   cap 1 : double-buffered (input + output) tiles fit the VMEM budget
    #   cap 2 : aim for ~target_grid_steps grid steps so the "parallel" axis can be
    #           sharded across v7x's two TensorCores and fetch/writeback overlap
    min_tile_rows = min(rows, _round_up(_cdiv(min_tile_bytes, padded_in_row), row_mult))
    rows_by_budget = max(min_tile_rows,
                         (vmem_budget_bytes // (2 * bytes_per_row)) // row_mult * row_mult)
    rows_by_steps = max(min_tile_rows,
                        _round_up(_cdiv(rows, max(1, int(target_grid_steps))), row_mult))
    tile_r = min(rows, rows_by_budget, rows_by_steps)
    if tile_r < rows:
        # Interior row tiles must be a multiple of the sublane packing; a block
        # equal to the full row extent is always legal, so only round when tiling.
        tile_r = max(row_mult, (tile_r // row_mult) * row_mult)

    # Resident VMEM from the *padded* tile (round tile_r up before estimating).
    padded_tile_r = _round_up(tile_r, row_mult)
    resident_vmem = 2 * padded_tile_r * bytes_per_row  # double-buffered in + out tiles
    vmem_limit = int(min(max(resident_vmem + (4 << 20), 16 << 20), vmem_cap - (4 << 20)))
    vmem_limit = int(min(max(vmem_limit, resident_vmem + (1 << 20)), 128 << 20))

    num_row_tiles = _cdiv(rows, tile_r)
    in_bytes = rows * (l_out if lane_aligned else l) * itemsize
    out_bytes = rows * l_out * itemsize
    cost = pl.CostEstimate(flops=0, transcendentals=0,
                           bytes_accessed=in_bytes + out_bytes)

    if lane_aligned:
        nl_blocks = nl // lane_w
        grid = (num_row_tiles, l_out // lane_w)
        grid_spec = pltpu.PrefetchScalarGridSpec(
            num_scalar_prefetch=0,
            grid=grid,
            in_specs=[pl.BlockSpec((tile_r, lane_w),
                                   lambda i, j: (i, j + nl_blocks))],
            out_specs=pl.BlockSpec((tile_r, lane_w), lambda i, j: (i, j)),
        )
        kernel = _copy_kernel
        dims = ("parallel", "parallel")
    else:
        grid = (num_row_tiles,)
        grid_spec = pltpu.PrefetchScalarGridSpec(
            num_scalar_prefetch=0,
            grid=grid,
            in_specs=[pl.BlockSpec((tile_r, l), lambda i: (i, 0))],
            out_specs=pl.BlockSpec((tile_r, l_out), lambda i: (i, 0)),
        )
        kernel = functools.partial(_crop_rows_kernel, nl=nl, l_out=l_out)
        dims = ("parallel",)

    out2 = pl.pallas_call(
        kernel,
        out_shape=jax.ShapeDtypeStruct((rows, l_out), x.dtype),
        grid_spec=grid_spec,
        compiler_params=pltpu.CompilerParams(
            dimension_semantics=dims,
            vmem_limit_bytes=vmem_limit,
        ),
        cost_estimate=cost,
    )(x2)

    return out2.reshape(n, c, l_out)


def _ref_crop(x: jnp.ndarray, nl: int, nr: int) -> jnp.ndarray:
    return x[:, :, nl:x.shape[-1] - nr]


if __name__ == "__main__":
    root_key = jax.random.PRNGKey(0)
    k1, k2, k3, k4 = jax.random.split(root_key, 4)

    # Case 1: DENSE01-sized Pad1D(1, 1) at (N, C, L) = (2, 64, 16).  l_out < 128
    # so the default (auto) path is the fusable XLA slice, per the review.
    x1 = jax.random.normal(k1, (2, 64, 16), dtype=jnp.float32)
    out1 = jax.block_until_ready(pad1d(x1, nl=1, nr=1))
    assert out1.shape == (2, 64, 14), out1.shape
    assert bool(jnp.array_equal(out1, _ref_crop(x1, 1, 1))), "case 1 mismatch"

    # Case 2: same small shape with the Pallas kernel forced (generic in-kernel
    # slice path; out block width equals the full output extent so it is legal).
    out2 = jax.block_until_ready(pad1d(x1, nl=1, nr=1, use_pallas=True))
    assert out2.shape == (2, 64, 14), out2.shape
    assert bool(jnp.array_equal(out2, _ref_crop(x1, 1, 1))), "case 2 mismatch"

    # Case 3: generic Pallas path, l_out >= 128, multi-step row grid with a
    # partial last tile (small min_tile_bytes to exercise tiling at test size).
    x3 = jax.random.normal(k2, (3, 40, 256), dtype=jnp.float32)  # rows = 120
    out3 = jax.block_until_ready(pad1d(x3, nl=2, nr=3, min_tile_bytes=32 * 1024))
    assert out3.shape == (3, 40, 251), out3.shape
    assert bool(jnp.array_equal(out3, _ref_crop(x3, 2, 3))), "case 3 mismatch"

    # Case 4: lane-aligned fast path (nl and l_out multiples of 128): crop folded
    # into the input BlockSpec, pure-copy kernel, discarded lanes never DMA'd.
    x4 = jax.random.normal(k3, (2, 64, 512), dtype=jnp.float32)
    out4 = jax.block_until_ready(pad1d(x4, nl=128, nr=128, min_tile_bytes=64 * 1024))
    assert out4.shape == (2, 64, 256), out4.shape
    assert bool(jnp.array_equal(out4, _ref_crop(x4, 128, 128))), "case 4 mismatch"

    # Case 5: bf16, right-only crop with 128-multiple output width (aligned path,
    # nl == 0 branch: single full-width lane block).
    x5 = jax.random.normal(k4, (2, 64, 160), dtype=jnp.bfloat16)
    out5 = jax.block_until_ready(pad1d(x5, nl=0, nr=32))
    assert out5.shape == (2, 64, 128), out5.shape
    assert bool(jnp.array_equal(out5, _ref_crop(x5, 0, 32))), "case 5 mismatch"

    # Case 6: identity branch and input validation.
    assert pad1d(x1, 0, 0) is x1
    try:
        pad1d(x1, -1, 2)
        raise AssertionError("negative crop should have raised")
    except ValueError:
        pass

    print("KERNEL_OK")
</pallas_src>

<mosaic_0001>
module attributes {stable_mosaic.version = 11 : i64} {
  func.func @_crop_rows_kernel(%arg0: i32, %arg1: memref<128x16xf32, #tpu.memory_space<vmem>>, %arg2: memref<128x14xf32, #tpu.memory_space<vmem>>) attributes {dimension_semantics = [#tpu.dimension_semantics<parallel>], iteration_bounds = array<i64: 1>, scalar_prefetch = 0 : i64, scratch_operands = 0 : i64, tpu.core_type = #tpu.core_type<tc>, window_params = [{transform_indices = @transform_0, window_bounds = array<i64: 128, 16>}, {transform_indices = @transform_1, window_bounds = array<i64: 128, 14>}]} {
    %c0 = arith.constant 0 : index
    %c1 = arith.constant 1 : index
    %0 = vector.load %arg1[%c0, %c1] : memref<128x16xf32, #tpu.memory_space<vmem>>, vector<128x14xf32>
    %c0_0 = arith.constant 0 : index
    %c0_1 = arith.constant 0 : index
    %1 = vector.load %arg2[%c0_0, %c0_1] : memref<128x14xf32, #tpu.memory_space<vmem>>, vector<128x14xf32>
    tpu.vector_store %arg2[%c0_0, %c0_1], %0 {strides = array<i32>} : memref<128x14xf32, #tpu.memory_space<vmem>>, vector<128x14xf32>,
    return
  }
  func.func @transform_0(%arg0: i32) -> (i32, i32) {
    %c0_i32 = arith.constant 0 : i32
    %c0_i32_0 = arith.constant 0 : i32
    return %arg0, %c0_i32 : i32, i32
  }
  func.func @transform_1(%arg0: i32) -> (i32, i32) {
    %c0_i32 = arith.constant 0 : i32
    %c0_i32_0 = arith.constant 0 : i32
    return %arg0, %c0_i32 : i32, i32
  }
}

</mosaic_0001>

<bundles_post_ra>
// kernel: tpu_custom_call.1
= control target key start
LH: loop header
LB: loop body
LE: loop exit
PB: predicated region body
PF: predicated region fallthrough
CT: control target
= control target key end

     0   :  { %s110_s10 = smov 127   ;;  %vm88_vm0 = vcmask 113664   ;;  %s249_s0 = inlined_call_operand.vmem [shape: f32[128,16], index: 0, kind: input, shape index: {}]   ;;  %s250_s1 = inlined_call_operand.vmem [shape: f32[128,14], index: 1, kind: output, shape index: {}]  }
   0x1   :  { %v8_v0 = vld [vmem:[%s249_s0] sm:$0xff]  ;;  %v10_v1 = vld [vmem:[%s249_s0 + $0x10] sm:$0xff]  ;;  %v9_v3 = vld [vmem:[%s249_s0 + $0x8] sm:$0xff] }
   0x2   :  { %40 = vrot.lane.b32.xlu0 %v8_v0, %s110_s10  ;;  %44 = vrot.lane.b32.xlu1 %v10_v1, %s110_s10  ;;  %v12_v2 = vld [vmem:[%s249_s0 + $0x20] sm:$0xff]  ;;  %v11_v4 = vld [vmem:[%s249_s0 + $0x18] sm:$0xff] }
   0x3   :  { %48 = vrot.lane.b32.xlu2 %v12_v2, %s110_s10  ;;  %v13_v5 = vld [vmem:[%s249_s0 + $0x28] sm:$0xff]  ;;  %v14_v6 = vld [vmem:[%s249_s0 + $0x30] sm:$0xff]  ;;  %v15_v7 = vld [vmem:[%s249_s0 + $0x38] sm:$0xff] }
   0x4   :  { %v16_v8 = vld [vmem:[%s249_s0 + $0x40] sm:$0xff]  ;;  %v17_v9 = vld [vmem:[%s249_s0 + $0x48] sm:$0xff]  ;;  %v18_v10 = vld [vmem:[%s249_s0 + $0x50] sm:$0xff] }
   0x5   :  { %v19_v11 = vld [vmem:[%s249_s0 + $0x58] sm:$0xff]  ;;  %v20_v12 = vld [vmem:[%s249_s0 + $0x60] sm:$0xff]  ;;  %v21_v13 = vld [vmem:[%s249_s0 + $0x68] sm:$0xff] }
   0x6   :  { %v22_v14 = vld [vmem:[%s249_s0 + $0x70] sm:$0xff]  ;;  %v23_v15 = vld [vmem:[%s249_s0 + $0x78] sm:$0xff] }
   0xa   :  { %42 = vrot.lane.b32.xlu0 %v9_v3, %s110_s10  ;;  %46 = vrot.lane.b32.xlu1 %v11_v4, %s110_s10 }
   0xb   :  { %50 = vrot.lane.b32.xlu2 %v13_v5, %s110_s10 }
  0x12   :  { %52 = vrot.lane.b32.xlu0 %v14_v6, %s110_s10  ;;  %54 = vrot.lane.b32.xlu1 %v15_v7, %s110_s10 }
  0x13   :  { %56 = vrot.lane.b32.xlu2 %v16_v8, %s110_s10 }
  0x1a   :  { %58 = vrot.lane.b32.xlu0 %v17_v9, %s110_s10  ;;  %60 = vrot.lane.b32.xlu1 %v18_v10, %s110_s10 }
  0x1b   :  { %62 = vrot.lane.b32.xlu2 %v19_v11, %s110_s10 }
  0x22   :  { %64 = vrot.lane.b32.xlu0 %v20_v12, %s110_s10  ;;  %66 = vrot.lane.b32.xlu1 %v21_v13, %s110_s10 }
  0x23   :  { %68 = vrot.lane.b32.xlu2 %v22_v14, %s110_s10 }
  0x2a   :  { %70 = vrot.lane.b32.xlu0 %v23_v15, %s110_s10 }
  0x5d   :  { %v49_v16 = vpop.permute.xlu2 %48 }
  0x5e   :  { %93 = vst.msk [vmem:[%s250_s1 + $0x20] sm:$0xff] %vm88_vm0, %v49_v16 }
  0x65   :  { %v51_v17 = vpop.permute.xlu2 %50 }
  0x66   :  { %94 = vst.msk [vmem:[%s250_s1 + $0x28] sm:$0xff] %vm88_vm0, %v51_v17 }
  0x6d   :  { %v57_v18 = vpop.permute.xlu2 %56 }
  0x6e   :  { %97 = vst.msk [vmem:[%s250_s1 + $0x40] sm:$0xff] %vm88_vm0, %v57_v18 }
  0x74   :  { %v41_v19 = vpop.permute.xlu0 %40  ;;  %v45_v20 = vpop.permute.xlu1 %44 }
  0x75   :  { %89 = vst.msk [vmem:[%s250_s1] sm:$0xff] %vm88_vm0, %v41_v19  ;;  %v63_v21 = vpop.permute.xlu2 %62 }
  0x76   :  { %91 = vst.msk [vmem:[%s250_s1 + $0x10] sm:$0xff] %vm88_vm0, %v45_v20 }
  0x77   :  { %100 = vst.msk [vmem:[%s250_s1 + $0x58] sm:$0xff] %vm88_vm0, %v63_v21 }
  0x7c   :  { %v43_v22 = vpop.permute.xlu0 %42  ;;  %v47_v23 = vpop.permute.xlu1 %46 }
  0x7d   :  { %90 = vst.msk [vmem:[%s250_s1 + $0x8] sm:$0xff] %vm88_vm0, %v43_v22  ;;  %v69_v24 = vpop.permute.xlu2 %68 }
  0x7e   :  { %92 = vst.msk [vmem:[%s250_s1 + $0x18] sm:$0xff] %vm88_vm0, %v47_v23 }
  0x7f   :  { %103 = vst.msk [vmem:[%s250_s1 + $0x70] sm:$0xff] %vm88_vm0, %v69_v24 }
  0x84   :  { %v53_v25 = vpop.permute.xlu0 %52  ;;  %v55_v26 = vpop.permute.xlu1 %54 }
  0x85   :  { %95 = vst.msk [vmem:[%s250_s1 + $0x30] sm:$0xff] %vm88_vm0, %v53_v25 }
  0x86   :  { %96 = vst.msk [vmem:[%s250_s1 + $0x38] sm:$0xff] %vm88_vm0, %v55_v26 }
  0x8c   :  { %v59_v27 = vpop.permute.xlu0 %58  ;;  %v61_v28 = vpop.permute.xlu1 %60 }
  0x8d   :  { %98 = vst.msk [vmem:[%s250_s1 + $0x48] sm:$0xff] %vm88_vm0, %v59_v27 }
  0x8e   :  { %99 = vst.msk [vmem:[%s250_s1 + $0x50] sm:$0xff] %vm88_vm0, %v61_v28 }
  0x94   :  { %v65_v29 = vpop.permute.xlu0 %64  ;;  %v67_v30 = vpop.permute.xlu1 %66 }
  0x95   :  { %101 = vst.msk [vmem:[%s250_s1 + $0x60] sm:$0xff] %vm88_vm0, %v65_v29 }
  0x96   :  { %102 = vst.msk [vmem:[%s250_s1 + $0x68] sm:$0xff] %vm88_vm0, %v67_v30 }
  0x9c   :  { %v71_v31 = vpop.permute.xlu0 %70 }
  0x9d   :  { %104 = vst.msk [vmem:[%s250_s1 + $0x78] sm:$0xff] %vm88_vm0, %v71_v31 }

</bundles_post_ra>
